<compile_context>
chip_gen: v6e
topology: v6e:2x2x1
jax: 0.10.0
libtpu: 0.0.40
codegen_flags: <defaults>
</compile_context>

<pallas_src>
import functools

import jax
import jax.numpy as jnp
from jax import lax
from jax.experimental import pallas as pl
from jax.experimental.pallas import tpu as pltpu


def _focal_loss_kernel(logits_ref, target_ref, out_ref, *,
                       num_classes, gamma, weights, ragged, valid_rows_last):
    # logits_ref: (C, R, 128), target_ref: (R, 128), out_ref: (1, 128)
    xs = [logits_ref[c].astype(jnp.float32) for c in range(num_classes)]
    t = target_ref[...]

    if num_classes == 2:
        # logsumexp(x - max(x)) = log1p(exp(-|x0 - x1|))   (1 exp + 1 log1p)
        m = jnp.maximum(xs[0], xs[1])
        lse = jnp.log1p(jnp.exp(-jnp.abs(xs[0] - xs[1])))
        # Gather x[target]; t == -1 picks xs[0] but w_t is 0 there, so CE = 0.
        picked = jnp.where(t == 1, xs[1], xs[0])
        if float(weights[0]) == float(weights[1]):
            w_t = jnp.where(t >= 0, jnp.float32(weights[0]), jnp.float32(0.0))
        else:
            w_t = jnp.where(t == 1, jnp.float32(weights[1]),
                            jnp.where(t == 0, jnp.float32(weights[0]),
                                      jnp.float32(0.0)))
    else:
        m = xs[0]
        for c in range(1, num_classes):
            m = jnp.maximum(m, xs[c])
        s = jnp.exp(xs[0] - m)
        for c in range(1, num_classes):
            s = s + jnp.exp(xs[c] - m)
        lse = jnp.log(s)
        picked = jnp.zeros_like(m)
        w_t = jnp.zeros_like(m)
        for c in range(num_classes):
            sel = t == c
            picked = jnp.where(sel, xs[c], picked)
            w_t = jnp.where(sel, jnp.float32(weights[c]), w_t)

    # CE = -w[t] * log_softmax(x)[t];  max_c log_softmax(x) = -lse.
    ce = -w_t * (picked - m - lse)
    base = 1.0 + lse                       # = 1 - max(log_softmax) >= 1

    g = float(gamma)
    if g == 0.0:
        focal = ce
    elif g.is_integer() and g > 0:
        fw = base                          # integer gamma -> VPU multiplies
        for _ in range(int(g) - 1):
            fw = fw * base
        focal = fw * ce
    else:
        focal = (base ** jnp.float32(g)) * ce

    if ragged:
        # Only the last pixel block reads past the array; mask only there.
        last = pl.num_programs(1) - 1
        b = pl.program_id(1)

        @pl.when(b != last)
        def _store_full():
            out_ref[...] = jnp.sum(focal, axis=0, keepdims=True)

        @pl.when(b == last)
        def _store_masked():
            row = lax.broadcasted_iota(jnp.int32, focal.shape, 0)
            masked = jnp.where(row < valid_rows_last, focal, 0.0)
            out_ref[...] = jnp.sum(masked, axis=0, keepdims=True)
    else:
        out_ref[...] = jnp.sum(focal, axis=0, keepdims=True)


def _pick_block_rows(rows, cap):
    """Pick the pixel-row tile R and block count; prefer R dividing rows."""
    cap = max(8, (cap // 8) * 8)
    if rows <= cap:
        return rows, 1, False
    # Prefer a divisor of rows (multiple of 8, not too small) -> no ragged mask.
    r = cap
    while r >= max(8, cap // 2):
        if rows % r == 0:
            return r, rows // r, False
        r -= 8
    n_blocks = pl.cdiv(rows, cap)
    return cap, n_blocks, (n_blocks * cap != rows)


def focal_loss_image(logits_nchw, target_nhw, *, gamma=2, ce_weights=(1.0, 1.0),
                     reduction="mean", block_rows=2048, vmem_limit_bytes=None):
    assert reduction in ("mean", "sum")
    # TODO(synk): reduction='none' (per-pixel loss map output) not wired up here.
    N, C, H, W = logits_nchw.shape
    assert C == len(ce_weights)
    HW = H * W

    # Free reshape NCHW -> (N, C, HW); the lane pad only fires if HW % 128 != 0.
    # TODO(synk): the pad is a full extra HBM pass over logits — arrange producer
    # shapes so H*W % 128 == 0 to skip it (common image sizes already satisfy it).
    rows = pl.cdiv(HW, 128)
    HW_pad = rows * 128
    logits3 = logits_nchw.reshape(N, C, HW)
    target2 = target_nhw.reshape(N, HW)
    if not jnp.issubdtype(target2.dtype, jnp.signedinteger):
        target2 = target2.astype(jnp.int32)
    if HW_pad != HW:
        logits3 = jnp.pad(logits3, ((0, 0), (0, 0), (0, HW_pad - HW)))
        target2 = jnp.pad(target2, ((0, 0), (0, HW_pad - HW)), constant_values=-1)
    logits4 = logits3.reshape(N, C, rows, 128)
    target3 = target2.reshape(N, rows, 128)

    R, n_blocks, ragged = _pick_block_rows(rows, block_rows)
    valid_rows_last = rows - (n_blocks - 1) * R

    kernel = functools.partial(
        _focal_loss_kernel,
        num_classes=C,
        gamma=gamma,
        weights=tuple(float(w) for w in ce_weights),
        ragged=ragged,
        valid_rows_last=valid_rows_last,
    )

    cp_kwargs = dict(dimension_semantics=("parallel", "parallel"))
    if vmem_limit_bytes is not None:
        cp_kwargs["vmem_limit_bytes"] = vmem_limit_bytes

    # Per-block partial sums: no carried accumulator, both grid axes parallel.
    partials = pl.pallas_call(
        kernel,
        out_shape=jax.ShapeDtypeStruct((N, n_blocks, 1, 128), jnp.float32),
        grid=(N, n_blocks),
        in_specs=[
            pl.BlockSpec((None, C, R, 128), lambda n, b: (n, 0, b, 0)),
            pl.BlockSpec((None, R, 128), lambda n, b: (n, b, 0)),
        ],
        out_specs=pl.BlockSpec((None, None, 1, 128), lambda n, b: (n, b, 0, 0)),
        compiler_params=pltpu.CompilerParams(**cp_kwargs),
    )(logits4, target3)

    total = jnp.sum(partials)
    if reduction == "mean":
        return total / jnp.float32(N * HW)
    return total


def _reference_focal_loss(logits, target, gamma, ce_weights):
    # Pure-JAX reference mirroring the PyTorch module.
    logsm = jax.nn.log_softmax(logits.astype(jnp.float32), axis=1)   # (N,C,H,W)
    valid = target != -1
    t_safe = jnp.where(valid, target, 0)
    picked = jnp.take_along_axis(logsm, t_safe[:, None, :, :], axis=1)[:, 0]
    w = jnp.asarray(ce_weights, jnp.float32)[t_safe]
    ce = jnp.where(valid, -w * picked, 0.0)
    max_ls = jnp.max(logsm, axis=1)
    loss = (1.0 - max_ls) ** gamma * ce
    return loss.mean()


if __name__ == "__main__":
    key = jax.random.PRNGKey(0)
    k_logits, k_target = jax.random.split(key)

    N, C, H, W = 2, 2, 16, 16          # module's ce_weights=(1,1) implies 2 classes
    gamma = 2
    ce_weights = (1.0, 1.0)

    logits = jax.random.normal(k_logits, (N, C, H, W), dtype=jnp.float32)
    # targets in {-1, 0, 1}; -1 exercises ignore_index
    target = jax.random.randint(k_target, (N, H, W), minval=-1, maxval=C,
                                dtype=jnp.int32)

    out = focal_loss_image(logits, target, gamma=gamma, ce_weights=ce_weights,
                           reduction="mean")
    out = jax.block_until_ready(out)

    ref = _reference_focal_loss(logits, target, gamma, ce_weights)
    assert jnp.allclose(out, ref, rtol=2e-5, atol=1e-6), (out, ref)
    print("KERNEL_OK")
</pallas_src>

<mosaic_0001>
module attributes {stable_mosaic.version = 11 : i64} {
  func.func @_focal_loss_kernel(%arg0: i32, %arg1: i32, %arg2: memref<1x2x2x128xf32, #tpu.memory_space<vmem>>, %arg3: memref<1x2x128xi32, #tpu.memory_space<vmem>>, %arg4: memref<1x1x1x128xf32, #tpu.memory_space<vmem>>) attributes {dimension_semantics = [#tpu.dimension_semantics<parallel>, #tpu.dimension_semantics<parallel>], iteration_bounds = array<i64: 2, 1>, scalar_prefetch = 0 : i64, scratch_operands = 0 : i64, tpu.core_type = #tpu.core_type<tc>, window_params = [{transform_indices = @transform_0, window_bounds = array<i64: 1, 2, 2, 128>}, {transform_indices = @transform_1, window_bounds = array<i64: 1, 2, 128>}, {transform_indices = @transform_2, window_bounds = array<i64: 1, 1, 1, 128>}]} {
    %c0 = arith.constant 0 : index
    %c0_0 = arith.constant 0 : index
    %c0_1 = arith.constant 0 : index
    %c0_2 = arith.constant 0 : index
    %0 = vector.load %arg2[%c0, %c0_0, %c0_1, %c0_2] : memref<1x2x2x128xf32, #tpu.memory_space<vmem>>, vector<1x1x2x128xf32>
    %1 = vector.shape_cast %0 : vector<1x1x2x128xf32> to vector<2x128xf32>
    %c0_3 = arith.constant 0 : index
    %c1 = arith.constant 1 : index
    %c0_4 = arith.constant 0 : index
    %c0_5 = arith.constant 0 : index
    %2 = vector.load %arg2[%c0_3, %c1, %c0_4, %c0_5] : memref<1x2x2x128xf32, #tpu.memory_space<vmem>>, vector<1x1x2x128xf32>
    %3 = vector.shape_cast %2 : vector<1x1x2x128xf32> to vector<2x128xf32>
    %c0_6 = arith.constant 0 : index
    %c0_7 = arith.constant 0 : index
    %c0_8 = arith.constant 0 : index
    %4 = vector.load %arg3[%c0_6, %c0_7, %c0_8] : memref<1x2x128xi32, #tpu.memory_space<vmem>>, vector<1x2x128xi32>
    %5 = vector.shape_cast %4 : vector<1x2x128xi32> to vector<2x128xi32>
    %6 = arith.maximumf %1, %3 : vector<2x128xf32>
    %7 = arith.subf %1, %3 : vector<2x128xf32>
    %8 = math.absf %7 : vector<2x128xf32>
    %cst = arith.constant 0.000000e+00 : f32
    %9 = vector.broadcast %cst : f32 to vector<2x128xf32>
    %10 = arith.subf %9, %8 : vector<2x128xf32>
    %11 = math.exp %10 : vector<2x128xf32>
    %12 = math.log1p %11 : vector<2x128xf32>
    %c1_i32 = arith.constant 1 : i32
    %13 = vector.broadcast %c1_i32 : i32 to vector<2x128xi32>
    %14 = arith.cmpi eq, %5, %13 : vector<2x128xi32>
    %15 = arith.select %14, %3, %1 : vector<2x128xi1>, vector<2x128xf32>
    %c0_i32 = arith.constant 0 : i32
    %16 = vector.broadcast %c0_i32 : i32 to vector<2x128xi32>
    %17 = arith.cmpi sge, %5, %16 : vector<2x128xi32>
    %cst_9 = arith.constant 1.000000e+00 : f32
    %cst_10 = arith.constant 0.000000e+00 : f32
    %18 = vector.broadcast %cst_9 : f32 to vector<2x128xf32>
    %19 = vector.broadcast %cst_10 : f32 to vector<2x128xf32>
    %20 = arith.select %17, %18, %19 : vector<2x128xi1>, vector<2x128xf32>
    %cst_11 = arith.constant 0.000000e+00 : f32
    %21 = vector.broadcast %cst_11 : f32 to vector<2x128xf32>
    %22 = arith.subf %21, %20 : vector<2x128xf32>
    %23 = arith.subf %15, %6 : vector<2x128xf32>
    %24 = arith.subf %23, %12 : vector<2x128xf32>
    %25 = arith.mulf %22, %24 : vector<2x128xf32>
    %cst_12 = arith.constant 1.000000e+00 : f32
    %26 = vector.broadcast %cst_12 : f32 to vector<2x128xf32>
    %27 = arith.addf %26, %12 : vector<2x128xf32>
    %28 = arith.mulf %27, %27 : vector<2x128xf32>
    %29 = arith.mulf %28, %25 : vector<2x128xf32>
    %cst_13 = arith.constant dense<0.000000e+00> : vector<128xf32>
    %30 = vector.multi_reduction <add>, %29, %cst_13 [0] : vector<2x128xf32> to vector<128xf32>
    %31 = vector.shape_cast %30 : vector<128xf32> to vector<1x128xf32>
    %c0_14 = arith.constant 0 : index
    %c0_15 = arith.constant 0 : index
    %c0_16 = arith.constant 0 : index
    %c0_17 = arith.constant 0 : index
    %32 = vector.load %arg4[%c0_14, %c0_15, %c0_16, %c0_17] : memref<1x1x1x128xf32, #tpu.memory_space<vmem>>, vector<1x1x1x128xf32>
    %33 = vector.shape_cast %32 : vector<1x1x1x128xf32> to vector<1x128xf32>
    %34 = vector.shape_cast %31 : vector<1x128xf32> to vector<1x1x1x128xf32>
    tpu.vector_store %arg4[%c0_14, %c0_15, %c0_16, %c0_17], %34 {strides = array<i32>} : memref<1x1x1x128xf32, #tpu.memory_space<vmem>>, vector<1x1x1x128xf32>,
    return
  }
  func.func @transform_0(%arg0: i32, %arg1: i32) -> (i32, i32, i32, i32) {
    %c0_i32 = arith.constant 0 : i32
    %c0_i32_0 = arith.constant 0 : i32
    %c0_i32_1 = arith.constant 0 : i32
    return %arg0, %c0_i32, %arg1, %c0_i32_0 : i32, i32, i32, i32
  }
  func.func @transform_1(%arg0: i32, %arg1: i32) -> (i32, i32, i32) {
    %c0_i32 = arith.constant 0 : i32
    %c0_i32_0 = arith.constant 0 : i32
    return %arg0, %arg1, %c0_i32 : i32, i32, i32
  }
  func.func @transform_2(%arg0: i32, %arg1: i32) -> (i32, i32, i32, i32) {
    %c0_i32 = arith.constant 0 : i32
    %c0_i32_0 = arith.constant 0 : i32
    %c0_i32_1 = arith.constant 0 : i32
    return %arg0, %arg1, %c0_i32, %c0_i32_0 : i32, i32, i32, i32
  }
}

</mosaic_0001>

<bundles_post_ra>
// kernel: tpu_custom_call.1
= control target key start
LH: loop header
LB: loop body
LE: loop exit
PB: predicated region body
PF: predicated region fallthrough
CT: control target
= control target key end

     0   :  { %7 = vsyncpa [#allocation3], 0  ;;  %s789_s0 = inlined_call_operand.hbm [shape: f32[2,2,2,128], index: 0, kind: input, shape index: {}]   ;;  %s790_s1 = inlined_call_operand.hbm [shape: s32[2,2,128], index: 1, kind: input, shape index: {}]   ;;  %s791_s2 = inlined_call_operand.hbm [shape: f32[2,1,1,128], index: 2, kind: output, shape index: {}]  }
   0x1   :  { %9 = vsyncpa [#allocation3 + $0x1], 0 }
   0x2   :  { %10 = vsyncpa [#allocation6], 0 }
   0x3   :  { %12 = vsyncpa [#allocation6 + $0x1], 0 }
   0x4   :  { %13 = vsyncpa [#allocation4], 0 }
   0x5   :  { %15 = vsyncpa [#allocation4 + $0x1], 0  ;;  %s626_s9 = smov 0   ;;  %s628_s10 = smov 0  }
   0x6   :  { %s630_s11 = smov 0   ;;  %s632_s12 = smov 0  }
   0x7   :  { %s634_s13 = smov 0   ;;  %s636_s14 = smov 0  }
   0x8 LB: > { %s372_s15 = sadd.s32 4294967295, %s603_s14   ;;  %s373_s16 = sadd.s32 4294967294, %s603_s14   ;;  %s603_s14 = sphi %s636_s14, %s21_s14   ;;  %s599_s13 = sphi %s634_s13, %s803_s13   ;;  %s595_s12 = sphi %s632_s12, %s802_s12   ;;  %s591_s11 = sphi %s630_s11, %s801_s11   ;;  %s587_s10 = sphi %s628_s10, %s800_s10   ;;  %s583_s9 = sphi %s626_s9, %s799_s9  }
   0x9   : > { %s33_s17 = sadd.s32 1, %s599_s13  ;;  %s42_s18 = sadd.s32 1, %s591_s11 }
   0xa   : > { %p35_p0 = scmp.ge.s32.totalorder %s33_s17, 2  ;;  %p49_p1 = scmp.ne.s32.totalorder %s591_s11, %s587_s10 }
   0xb   : > { %p50_p2 = scmp.eq.s32.totalorder %s603_s14, 0  ;;  %p55_p3 = scmp.ne.s32.totalorder %s587_s10, %s583_s9 }
   0xc   : > { %s805_s17 = smov (%p35_p0, %s33_s17), 0  ;;  %p56_p5 = scmp.eq.s32.totalorder %s372_s15, 0 }
   0xd   : > { %p667_p4 = por %p50_p2, %p49_p1  ;;  %s37_s20 = ssub.s32 %s599_s13, %s805_s17 }
   0xe   : > { %p109_p6 = scmp.eq.s32.totalorder %s372_s15, 1  ;;  %p40_p7 = scmp.eq.s32.totalorder %s37_s20, 0 }
   0xf   : > { %p673_p8 = por %p56_p5, %p55_p3  ;;  %p115_p10 = scmp.eq.s32.totalorder %s373_s16, 1 }
  0x10   : > { %p677_p9 = por %p109_p6, %p49_p1  ;;  %p406_p13 = scmp.lt.s32.totalorder %s603_s14, 2 }
  0x11   : > { %s682_s23 = scalar_select %p40_p7, %s591_s11, %s42_s18  }
  0x12   : > { %p684_p11 = por %p115_p10, %p55_p3  ;;  %s691_s25 = sand.u32 1, %s591_s11  }
  0x13   : > { %s376_s26 = sshll.u32 %s691_s25, 2  ;;  %s388_s27 = sshll.u32 %s599_s13, 6 }
  0x14   : > { %s146_s30 = scalar_lea.hbm %s789_s0, %s388_s27  ;;  %s139_s3 = scalar_lea.vmem [#allocation2], %s376_s26 }
  0x15   : > { %s147_s4 = sshll.u32 %s139_s3, 4  ;;  %p700_p0 = pnand %p406_p13, %p667_p4  ;;  %s148_s4 = int_to_ptr.vmem [resolvable:$true] %s147_s4 }
  0x16   : > { %p381_p1 = scmp.ge.s32.totalorder %s603_s14, 1  ;;  %s136_s6 = scalar_lea.sflag [#allocation3], %s691_s25 }
  0x17   : > { %p465_p2 = pneg %p700_p0  ;;  %s476_s7 = scalar_lea.vmem %s148_s4, 64 }
  0x18   : > { %p477_p3 = scmp.ne.s32.totalorder %s148_s4, %s476_s7  ;;  %s605_s8 = smov [#allocation2]  }
  0x19   : > { %s481_s15 = sshll.u32 %s605_s8, 4  ;;  %s482_s15 = int_to_ptr.vmem [resolvable:$false] %s481_s15 }
  0x1a   : > { %p479_p5 = pnand %p477_p3, %p465_p2  ;;  %s483_s16 = scalar_lea.vmem %s482_s15, 128 }
  0x1b   : > { %p484_p4 = scmp.lt.s32.totalorder %s148_s4, %s482_s15  ;;  %p485_p7 = scmp.lt.s32.totalorder %s483_s16, %s476_s7 }
  0x1c   : > { %p480_p6 = pneg %p479_p5 }
  0x1d   : > { %p486_p10 = por %p485_p7, %p484_p4 }
  0x1f   : > { %p487_p13 = pnand %p486_p10, %p480_p6 }
  0x21   : > { %490 = shalt.err (!%p487_p13)
}
  0x22   : > { %s606_s18 = smov 32   ;;  %s607_s19 = smov 2  }
  0x23   : > { %398 = dma.hbm_to_vmem [thread:$0]  (!%p700_p0), %s146_s30, 64, %s148_s4, %s136_s6, %s606_s18, %s606_s18, %s607_s19  }
  0x24   : > { %p174_p3 = scmp.lt.s32.totalorder %s603_s14, 3  ;;  %s379_s20 = sshll.u32 %s691_s25, 1 }
  0x25   : > { %s380_s26 = sshll.u32 %s599_s13, 5  ;;  %s161_s7 = scalar_lea.vmem [#allocation5], %s379_s20 }
  0x26   : > { %p718_p5 = pnand %p381_p1, %p174_p3  ;;  %s167_s3 = scalar_lea.hbm %s790_s1, %s380_s26 }
  0x27   : > { %s169_s8 = sshll.u32 %s161_s7, 4  ;;  %s158_s15 = scalar_lea.sflag [#allocation6], %s691_s25  ;;  %s170_s8 = int_to_ptr.vmem [resolvable:$true] %s169_s8 }
  0x28   : > { %s504_s16 = scalar_lea.vmem %s170_s8, 32  ;;  %s608_s30 = smov [#allocation5]  }
  0x29   : > { %p505_p6 = scmp.ne.s32.totalorder %s170_s8, %s504_s16  ;;  %s509_s4 = sshll.u32 %s608_s30, 4  ;;  %s510_s4 = int_to_ptr.vmem [resolvable:$false] %s509_s4 }
  0x2a   : > { %s511_s6 = scalar_lea.vmem %s510_s4, 64  ;;  %p512_p1 = scmp.lt.s32.totalorder %s170_s8, %s510_s4 }
  0x2b   : > { %p507_p4 = pnand %p505_p6, %p465_p2  ;;  %p513_p10 = scmp.lt.s32.totalorder %s511_s6, %s504_s16 }
  0x2d   : > { %p508_p7 = pneg %p507_p4  ;;  %p514_p13 = por %p513_p10, %p512_p1 }
  0x2f   : > { %p515_p3 = pnand %p514_p13, %p508_p7 }
  0x31   : > { %518 = shalt.err (!%p515_p3)
}
  0x32   : > { %401 = dma.hbm_to_vmem [thread:$0]  (!%p700_p0), %s167_s3, 32, %s170_s8, %s158_s15  }
  0x33   : > { %178 = sbr.rel (%p718_p5) target bundleno = 134 (0x86), region = 28  ;;  %s734_s25 = sand.u32 (!%p718_p5), 1, %s587_s10  }
  0x34   : > { %s382_s18 = sshll.u32 (!%p718_p5), %s734_s25, 2  ;;  %s181_s19 = scalar_lea.sflag (!%p718_p5), [#allocation3], %s734_s25 }
  0x35   : > { %s184_s20 = scalar_lea.vmem (!%p718_p5), [#allocation2], %s382_s18 }
  0x38   : > { %570 = dma.done.wait (%p673_p8), %s181_s19, 64  }
  0x39   : > { %572 = vsyncadd (%p673_p8), %s181_s19, 4294967232  ;;  %s383_s5 = sshll.u32 %s734_s25, 1  ;;  %s190_s26 = scalar_lea.sflag [#allocation6], %s734_s25 }
  0x3a   : > { %s193_s27 = scalar_lea.vmem [#allocation5], %s383_s5 }
  0x3b   : > { %574 = dma.done.wait (%p673_p8), %s190_s26, 32  }
  0x3c   : > { %576 = vsyncadd (%p673_p8), %s190_s26, 4294967264  ;;  %v218_v0 = vld [vmem:[%s184_s20] sm:$0x3]  ;;  %v384_v1 = vld [vmem:[%s184_s20 + $0x2] sm:$0x3]  ;;  %v609_v15 = vmov 0.0  }
  0x3d   : > { %v223_v2 = vsub.f32 %v218_v0, %v384_v1  ;;  %v221_v8 = vld [vmem:[%s193_s27] sm:$0x3]  ;;  %v222_v11 = vmax.f32 %v218_v0, %v384_v1  ;;  %vm248_vm3 = vcmask 1041408   ;;  %s217_s21 = scalar_lea.vmem [#allocation7], %s734_s25  ;;  %s385_s29 = sshll.u32 %s595_s12, 4 }
  0x3e   : > { %vm237_vm0 = vcmp.eq.s32.totalorder %v221_v8, 1  ;;  %vm239_vm1 = vcmp.ge.s32.totalorder %v221_v8, 0  ;;  %s271_s28 = sshll.u32 %s217_s21, 4  ;;  %s269_s8 = scalar_lea.hbm %s791_s2, %s385_s29  ;;  %s272_s28 = int_to_ptr.vmem [resolvable:$true] %s271_s28 }
  0x3f   : > { %v224_v3 = vand.u32 2147483647, %v223_v2  ;;  %v238_v13 = vsel %vm237_vm0, %v384_v1, %v218_v0  ;;  %v240_v16 = vsel %vm239_vm1, 1.0, %v609_v15  ;;  %s258_s15 = scalar_lea.sflag [#allocation4], %s734_s25  ;;  %s519_s16 = scalar_lea.vmem %s272_s28, 16 }
  0x40   : > { %v242_v18 = vsub.f32 %v238_v13, %v222_v11  ;;  %v241_v20 = vsub.f32 0.0, %v240_v16  ;;  %p520_p8 = scmp.ne.s32.totalorder %s272_s28, %s519_s16  ;;  %s610_s30 = smov [#allocation7]  }
  0x41   : > { %v225_v4 = vsub.f32 0.0, %v224_v3  ;;  %s523_s4 = sshll.u32 %s610_s30, 4  ;;  %s524_s4 = int_to_ptr.vmem [resolvable:$false] %s523_s4 }
  0x42   : > { %p521_p0 = pnand %p520_p8, %p677_p9  ;;  %s525_s6 = scalar_lea.vmem %s524_s4, 32 }
  0x43   : > { %v226_v5 = vmul.f32 1.442695, %v225_v4  ;;  %p526_p5 = scmp.lt.s32.totalorder %s272_s28, %s524_s4  ;;  %p527_p6 = scmp.lt.s32.totalorder %s525_s6, %s519_s16 }
  0x44   : > { %p522_p2 = pneg %p521_p0 }
  0x45   : > { %459 = vpow2.f32 %v226_v5  ;;  %p528_p4 = por %p527_p6, %p526_p5 }
  0x47   : > { %p529_p7 = pnand %p528_p4, %p522_p2 }
  0x52   : > { %v460_v6 = vpop.eup %459 }
  0x53   : > { %v228_v7 = vadd.f32 1.0, %v460_v6  ;;  %v231_v9 = vmul.f32 -0.5, %v460_v6  ;;  %v234_v12 = vand.u32 2147483647, %v460_v6 }
  0x55   : > { %461 = vlog2.f32 %v228_v7  ;;  %v232_v10 = vadd.f32 1.0, %v231_v9  ;;  %vm235_vm2 = vcmp.lt.f32.partialorder %v234_v12, 0.0004427343 }
  0x57   : > { %v233_v14 = vmul.f32 %v460_v6, %v232_v10 }
  0x62   : > { %v462_v17 = vpop.eup %461 }
  0x63   : > { %v230_v19 = vmul.f32 0.6931472, %v462_v17 }
  0x65   : > { %v236_v21 = vsel %vm235_vm2, %v233_v14, %v230_v19 }
  0x66   : > { %v243_v22 = vsub.f32 %v242_v18, %v236_v21  ;;  %v245_v23 = vadd.f32 1.0, %v236_v21 }
  0x68   : > { %v244_v24 = vmul.f32 %v243_v22, %v241_v20  ;;  %v246_v25 = vmul.f32 %v245_v23, %v245_v23 }
  0x6a   : > { %v247_v26 = vmul.f32 %v246_v25, %v244_v24 }
  0x6c   : > { %v249_v27 = vsel %vm248_vm3, %v247_v26, 0.0 }
  0x6d   : > { %v250_v28 = vrot.slane %v249_v27, 4 }
  0x6f   : > { %v251_v29 = vadd.f32 %v250_v28, %v249_v27 }
  0x71   : > { %v252_v30 = vrot.slane %v251_v29, 2 }
  0x73   : > { %v253_v31 = vadd.f32 %v252_v30, %v251_v29 }
  0x75   : > { %v254_v32 = vrot.slane %v253_v31, 1 }
  0x77   : > { %v255_v33 = vadd.f32 %v254_v32, %v253_v31 }
  0x79   : > { %256 = vst [vmem:[%s217_s21] sm:$0x1] %v255_v33 }
  0x7a   : > { %532 = shalt.err (!%p529_p7)
}
  0x7b   : > { %s533_s12 = scalar_lea.hbm %s269_s8, 16  ;;  %s537_s19 = scalar_lea.hbm %s791_s2, 32 }
  0x7c   : > { %p534_p1 = scmp.ne.s32.totalorder %s269_s8, %s533_s12  ;;  %p538_p3 = scmp.lt.s32.totalorder %s269_s8, %s791_s2 }
  0x7d   : > { %p539_p8 = scmp.lt.s32.totalorder %s537_s19, %s533_s12 }
  0x7e   : > { %p535_p10 = pnand %p534_p1, %p677_p9 }
  0x7f   : > { %p540_p0 = por %p539_p8, %p538_p3 }
  0x80   : > { %p536_p13 = pneg %p535_p10 }
  0x82   : > { %p541_p12 = pnand %p540_p0, %p536_p13 }
  0x84   : > { %544 = shalt.err (!%p541_p12)
}
  0x85   : > { %393 = dma.vmem_to_hbm [thread:$0]  (%p677_p9), %s272_s28, 16, %s269_s8, %s258_s15  }
  0x86 PF: > { %s283_s26 = sand.u32 1, %s583_s9   ;;  %p798_p2 = scmp.ge.s32.totalorder %s603_s14, 2 }
  0x87   : > { %s284_s27 = scalar_lea.sflag [#allocation4], %s283_s26 }
  0x88   : > { %p403_p5 = pnand %p798_p2, %p684_p11 }
  0x8a   : > { %p404_p6 = pneg %p403_p5 }
  0x8c   : > { %578 = dma.done.wait (%p404_p6), %s284_s27, 16  }
  0x8d   : > { %580 = vsyncadd (%p404_p6), %s284_s27, 4294967280  ;;  %s21_s14 = sadd.s32 1, %s603_s14   ;;  %s799_s9 = smov %s587_s10 }
  0x8e   : > { %p18_p4 = scmp.ge.s32.totalorder %s21_s14, 4   ;;  %s800_s10 = smov %s591_s11 }
  0x8f   : > { %s801_s11 = smov %s682_s23  ;;  %s802_s12 = smov %s599_s13 }
  0x90   : > { %s803_s13 = smov %s805_s17  ;;  %20 = sbr.rel (!%p18_p4) target bundleno = 8 (0x8), region = 87 }
  0x95   :  { %288 = vsyncpa [#allocation3], 1 }
  0x96   :  { %290 = vsyncpa [#allocation3 + $0x1], 1 }
  0x97   :  { %291 = vsyncpa [#allocation6], 1 }
  0x98   :  { %293 = vsyncpa [#allocation6 + $0x1], 1 }
  0x99   :  { %294 = vsyncpa [#allocation4], 1 }
  0x9a   :  { %296 = vsyncpa [#allocation4 + $0x1], 1 }

</bundles_post_ra>
